<compile_context>
chip_gen: v7x
topology: tpu7x:2x2x1
jax: 0.10.0
libtpu: 0.0.40
codegen_flags: <defaults>
</compile_context>

<pallas_src>
import jax
import jax.numpy as jnp
from jax import lax
from jax.experimental import pallas as pl
from jax.experimental.pallas import tpu as pltpu


# ---------------------------------------------------------------------------
# helpers (all static Python ints)
# ---------------------------------------------------------------------------

def _cdiv(a: int, b: int) -> int:
    return (a + b - 1) // b


def _round_up(x: int, m: int) -> int:
    return _cdiv(x, m) * m


def _round_down(x: int, m: int) -> int:
    return (x // m) * m


_MAX_TILE_D = 8192                 # per-step feature tile cap (also caps unroll depth)
_SPLIT_BYTES = 2 * 1024 * 1024     # per-input size above which we split B in two tiles


def _vmem_limit_bytes() -> int:
    """Generation-aware VMEM budget: 3/4 of physical, capped at 96 MiB."""
    try:
        cap = int(pltpu.get_tpu_info().vmem_capacity_bytes)
    except Exception:
        cap = 64 * 1024 * 1024     # conservative fallback (v7x physical)
    return min((cap * 3) // 4, 96 * 1024 * 1024)


def _choose_tiles(B: int, D: int, itemsize: int, block_bytes: int):
    """Pick (tile_b, num_b, tile_d, num_d); blocks sized by bytes, not elems."""
    # Feature tile: keep the whole row when it fits one block's worth of
    # lanes; otherwise split D into lane-aligned chunks (reduction grid axis).
    if D <= _MAX_TILE_D:
        tile_d, num_d = D, 1
    else:
        num_d = _cdiv(D, _MAX_TILE_D)
        tile_d = _round_up(_cdiv(D, num_d), 128)
        num_d = _cdiv(D, tile_d)

    rows = block_bytes // max(1, tile_d * itemsize)
    tile_b = max(8, _round_down(rows, 8))

    if tile_b >= B:
        if B >= 16 and B * D * itemsize >= _SPLIT_BYTES:
            # Large problem: two balanced batch tiles so both v7x cores work.
            tile_b = _round_up(_cdiv(B, 2), 8)
        else:
            tile_b = B             # block dim == array dim (always legal)
    else:
        num_b = _cdiv(B, tile_b)
        if num_b % 2 == 1:
            # Prefer an even number of batch tiles for megacore balance.
            tile_b = _round_up(_cdiv(B, num_b + 1), 8)

    num_b = _cdiv(B, tile_b)
    return tile_b, num_b, tile_d, num_d


# ---------------------------------------------------------------------------
# kernels
# ---------------------------------------------------------------------------

def _make_single_kernel(D: int):
    """Whole feature dim in one block: no scratch, no pl.when."""
    n_full = D // 128
    rem = D - n_full * 128

    def kernel(a_ref, b_ref, o_ref):
        tb = a_ref.shape[0]
        row = None
        if n_full > 0:
            # Lane-dense partial sums: pure VPU adds over 128-lane chunks.
            acc = jnp.zeros((tb, 128), jnp.float32)
            for j in range(n_full):
                sl = slice(j * 128, (j + 1) * 128)
                d = a_ref[:, sl].astype(jnp.float32) - b_ref[:, sl].astype(jnp.float32)
                acc = acc + d * d
            # Single cross-lane reduce on the MXU -> lane-dense (8, tile_b).
            ones = jnp.ones((8, 128), jnp.float32)
            row = lax.dot_general(ones, acc, (((1,), (1,)), ((), ())),
                                  preferred_element_type=jnp.float32)
        if rem > 0:
            sl = slice(n_full * 128, D)
            d = a_ref[:, sl].astype(jnp.float32) - b_ref[:, sl].astype(jnp.float32)
            ones_t = jnp.ones((8, rem), jnp.float32)
            tail = lax.dot_general(ones_t, d * d, (((1,), (1,)), ((), ())),
                                   preferred_element_type=jnp.float32)
            row = tail if row is None else row + tail
        o_ref[...] = row.astype(o_ref.dtype)

    return kernel


def _make_multi_kernel(tile_d: int, D: int):
    """Feature dim split across a reduction grid axis; f32 lane-dense acc."""
    n_chunks = tile_d // 128
    need_mask = (D % tile_d) != 0   # last feature block is ragged -> mask it

    def kernel(a_ref, b_ref, o_ref, acc_ref):
        k = pl.program_id(1)

        @pl.when(k == 0)
        def _init():
            acc_ref[...] = jnp.zeros_like(acc_ref)

        acc = acc_ref[...]
        for j in range(n_chunks):
            sl = slice(j * 128, (j + 1) * 128)
            d = a_ref[:, sl].astype(jnp.float32) - b_ref[:, sl].astype(jnp.float32)
            sq = d * d
            if need_mask:
                col = (k * tile_d + j * 128
                       + lax.broadcasted_iota(jnp.int32, sq.shape, 1))
                sq = jnp.where(col < D, sq, 0.0)
            acc = acc + sq
        acc_ref[...] = acc

        @pl.when(k == pl.num_programs(1) - 1)
        def _finalize():
            ones = jnp.ones((8, 128), jnp.float32)
            row = lax.dot_general(ones, acc_ref[...], (((1,), (1,)), ((), ())),
                                  preferred_element_type=jnp.float32)
            o_ref[...] = row.astype(o_ref.dtype)

    return kernel


# ---------------------------------------------------------------------------
# wrapper
# ---------------------------------------------------------------------------

def distance_euclidean(anchor: jax.Array, another: jax.Array) -> jax.Array:
    """Squared Euclidean distance along axis 1. anchor/another: (B, D) -> (B,)."""
    assert anchor.shape == another.shape and anchor.ndim == 2
    B, D = anchor.shape
    out_dtype = anchor.dtype
    itemsize = jnp.dtype(anchor.dtype).itemsize

    vmem_limit = _vmem_limit_bytes()
    block_bytes = max(512 * 1024, vmem_limit // 12)
    tile_b, num_b, tile_d, num_d = _choose_tiles(B, D, itemsize, block_bytes)

    cost = pl.CostEstimate(
        flops=3 * B * D,
        transcendentals=0,
        bytes_accessed=(2 * B * D * itemsize
                        + 8 * num_b * tile_b * jnp.dtype(out_dtype).itemsize),
    )

    # Lane-dense output slab: each batch tile writes an (8, tile_b) block
    # whose 8 rows all hold that tile's per-row distances.
    out_shape = jax.ShapeDtypeStruct((num_b * 8, tile_b), out_dtype)

    if num_d == 1:
        kernel = _make_single_kernel(D)
        grid_spec = pltpu.PrefetchScalarGridSpec(
            num_scalar_prefetch=0,
            grid=(num_b,),
            in_specs=[pl.BlockSpec((tile_b, D), lambda i: (i, 0)),
                      pl.BlockSpec((tile_b, D), lambda i: (i, 0))],
            out_specs=pl.BlockSpec((8, tile_b), lambda i: (i, 0)),
        )
        dims = ("parallel",)
    else:
        kernel = _make_multi_kernel(tile_d, D)
        grid_spec = pltpu.PrefetchScalarGridSpec(
            num_scalar_prefetch=0,
            grid=(num_b, num_d),            # batch tiles (parallel), feature (reduction)
            in_specs=[pl.BlockSpec((tile_b, tile_d), lambda i, k: (i, k)),
                      pl.BlockSpec((tile_b, tile_d), lambda i, k: (i, k))],
            out_specs=pl.BlockSpec((8, tile_b), lambda i, k: (i, 0)),
            scratch_shapes=[pltpu.VMEM((tile_b, 128), jnp.float32)],
        )
        dims = ("parallel", "arbitrary")

    out2d = pl.pallas_call(
        kernel,
        out_shape=out_shape,
        grid_spec=grid_spec,
        compiler_params=pltpu.CompilerParams(
            dimension_semantics=dims,
            vmem_limit_bytes=vmem_limit,
        ),
        cost_estimate=cost,
    )(anchor, another)

    # One representative row per batch tile, flattened and trimmed to (B,).
    return out2d[0::8, :].reshape(-1)[:B]


# ---------------------------------------------------------------------------
# self-test
# ---------------------------------------------------------------------------

if __name__ == "__main__":
    key = jax.random.PRNGKey(0)

    # Primary small case (matches the module's (B, D) -> (B,) contract).
    k1, k2 = jax.random.split(key)
    B, D = 8, 32
    anchor = jax.random.normal(k1, (B, D), dtype=jnp.float32)
    another = jax.random.normal(k2, (B, D), dtype=jnp.float32)
    dist = distance_euclidean(anchor, another)
    jax.block_until_ready(dist)
    ref = jnp.sum((anchor - another) ** 2, axis=1)
    assert dist.shape == (B,)
    assert jnp.allclose(dist, ref, rtol=1e-5, atol=1e-5)

    # Unaligned shape (exercises the no-padding / ragged handling).
    k3, k4 = jax.random.split(k1)
    a2 = jax.random.normal(k3, (50, 300), dtype=jnp.float32)
    b2 = jax.random.normal(k4, (50, 300), dtype=jnp.float32)
    d2 = distance_euclidean(a2, b2)
    jax.block_until_ready(d2)
    r2 = jnp.sum((a2 - b2) ** 2, axis=1)
    assert jnp.allclose(d2, r2, rtol=1e-5, atol=1e-4)

    # Wide feature dim (exercises the multi-step reduction + lane mask).
    k5, k6 = jax.random.split(k2)
    a3 = jax.random.normal(k5, (16, 9000), dtype=jnp.float32)
    b3 = jax.random.normal(k6, (16, 9000), dtype=jnp.float32)
    d3 = distance_euclidean(a3, b3)
    jax.block_until_ready(d3)
    r3 = jnp.sum((a3 - b3) ** 2, axis=1)
    assert jnp.allclose(d3, r3, rtol=1e-4, atol=1e-3)

    print("KERNEL_OK")
</pallas_src>

<mosaic_0001>
module attributes {stable_mosaic.version = 11 : i64} {
  func.func @kernel(%arg0: i32, %arg1: memref<8x32xf32, #tpu.memory_space<vmem>>, %arg2: memref<8x32xf32, #tpu.memory_space<vmem>>, %arg3: memref<8x8xf32, #tpu.memory_space<vmem>>) attributes {dimension_semantics = [#tpu.dimension_semantics<parallel>], iteration_bounds = array<i64: 1>, scalar_prefetch = 0 : i64, scratch_operands = 0 : i64, tpu.core_type = #tpu.core_type<tc>, window_params = [{transform_indices = @transform_0, window_bounds = array<i64: 8, 32>}, {transform_indices = @transform_1, window_bounds = array<i64: 8, 32>}, {transform_indices = @transform_2, window_bounds = array<i64: 8, 8>}]} {
    %c0 = arith.constant 0 : index
    %c0_0 = arith.constant 0 : index
    %0 = vector.load %arg1[%c0, %c0_0] : memref<8x32xf32, #tpu.memory_space<vmem>>, vector<8x32xf32>
    %c0_1 = arith.constant 0 : index
    %c0_2 = arith.constant 0 : index
    %1 = vector.load %arg2[%c0_1, %c0_2] : memref<8x32xf32, #tpu.memory_space<vmem>>, vector<8x32xf32>
    %2 = arith.subf %0, %1 : vector<8x32xf32>
    %cst = arith.constant 1.000000e+00 : f32
    %3 = vector.broadcast %cst : f32 to vector<8x32xf32>
    %4 = arith.mulf %2, %2 : vector<8x32xf32>
    %cst_3 = arith.constant dense<0.000000e+00> : vector<8x8xf32>
    %5 = tpu.matmul %3, %4, %cst_3 {dimension_numbers = #tpu.dot_dimension_numbers<[1], [1], [0], [0], [0, 0, 1, 0], [], []>} : vector<8x32xf32>, vector<8x32xf32>, vector<8x8xf32> -> vector<8x8xf32>
    %c0_4 = arith.constant 0 : index
    %c0_5 = arith.constant 0 : index
    %6 = vector.load %arg3[%c0_4, %c0_5] : memref<8x8xf32, #tpu.memory_space<vmem>>, vector<8x8xf32>
    tpu.vector_store %arg3[%c0_4, %c0_5], %5 {strides = array<i32>} : memref<8x8xf32, #tpu.memory_space<vmem>>, vector<8x8xf32>,
    return
  }
  func.func @transform_0(%arg0: i32) -> (i32, i32) {
    %c0_i32 = arith.constant 0 : i32
    %c0_i32_0 = arith.constant 0 : i32
    return %arg0, %c0_i32 : i32, i32
  }
  func.func @transform_1(%arg0: i32) -> (i32, i32) {
    %c0_i32 = arith.constant 0 : i32
    %c0_i32_0 = arith.constant 0 : i32
    return %arg0, %c0_i32 : i32, i32
  }
  func.func @transform_2(%arg0: i32) -> (i32, i32) {
    %c0_i32 = arith.constant 0 : i32
    %c0_i32_0 = arith.constant 0 : i32
    return %arg0, %c0_i32 : i32, i32
  }
}

</mosaic_0001>

<bundles_post_ra>
// kernel: tpu_custom_call.1
= control target key start
LH: loop header
LB: loop body
LE: loop exit
PB: predicated region body
PF: predicated region fallthrough
CT: control target
= control target key end

     0   :  { %7 = vsyncpa [#allocation3], 0  ;;  %s279_s0 = inlined_call_operand.hbm [shape: f32[8,32], index: 0, kind: input, shape index: {}]   ;;  %s280_s1 = inlined_call_operand.hbm [shape: f32[8,32], index: 1, kind: input, shape index: {}]   ;;  %s281_s2 = inlined_call_operand.hbm [shape: f32[8,8], index: 2, kind: output, shape index: {}]  }
   0x1   :  { %8 = vsyncpa [#allocation6], 0 }
   0x2   :  { %9 = vsyncpa [#allocation4], 0  ;;  %s222_s9 = smov [#allocation2]   ;;  %s223_s11 = smov [#allocation5]  }
   0x3   :  { %s16_s10 = sshll.u32 %s222_s9, 4  ;;  %s26_s12 = sshll.u32 %s223_s11, 4  ;;  %s17_s10 = int_to_ptr.vmem [resolvable:$true] %s16_s10  ;;  %s27_s12 = int_to_ptr.vmem [resolvable:$true] %s26_s12 }
   0x4   :  { %s150_s15 = scalar_lea.hbm %s279_s0, 128 }
   0x5   :  { %p151_p0 = scmp.ne.s32.totalorder %s279_s0, %s150_s15  ;;  %p154_p1 = scmp.lt.u32.totalorder %s150_s15, %s279_s0 }
   0x7   :  { %p156_p2 = pnand %p154_p1, %p151_p0 }
   0x9   :  { %159 = shalt.err (!%p156_p2)
}
   0xa   :  { %s160_s20 = scalar_lea.vmem %s17_s10, 128  ;;  %p165_p4 = scmp.lt.s32.totalorder %s17_s10, %s17_s10 }
   0xb   :  { %p161_p3 = scmp.ne.s32.totalorder %s17_s10, %s160_s20  ;;  %p166_p5 = scmp.lt.s32.totalorder %s160_s20, %s160_s20 }
   0xd   :  { %p167_p6 = por %p166_p5, %p165_p4 }
   0xf   :  { %p168_p7 = pnand %p167_p6, %p161_p3 }
  0x11   :  { %171 = shalt.err (!%p168_p7)
}
  0x12   :  { %19 = dma.hbm_to_vmem [thread:$0]  %s279_s0, 128, %s17_s10, [#allocation3]  }
  0x13   :  { %s172_s25 = scalar_lea.hbm %s280_s1, 128 }
  0x14   :  { %p173_p8 = scmp.ne.s32.totalorder %s280_s1, %s172_s25  ;;  %p176_p9 = scmp.lt.u32.totalorder %s172_s25, %s280_s1 }
  0x16   :  { %p178_p10 = pnand %p176_p9, %p173_p8 }
  0x18   :  { %181 = shalt.err (!%p178_p10)
}
  0x19   :  { %s182_s30 = scalar_lea.vmem %s27_s12, 128  ;;  %p187_p12 = scmp.lt.s32.totalorder %s27_s12, %s27_s12 }
  0x1a   :  { %p183_p11 = scmp.ne.s32.totalorder %s27_s12, %s182_s30  ;;  %p188_p13 = scmp.lt.s32.totalorder %s182_s30, %s182_s30 }
  0x1c   :  { %p189_p0 = por %p188_p13, %p187_p12 }
  0x1e   :  { %p190_p1 = pnand %p189_p0, %p183_p11 }
  0x20   :  { %193 = shalt.err (!%p190_p1)
}
  0x21   :  { %29 = dma.hbm_to_vmem [thread:$0]  %s280_s1, 128, %s27_s12, [#allocation6]  }
  0x22   :  { %216 = dma.done.wait [#allocation3], 128  }
  0x23   :  { %217 = vsyncadd [#allocation3], 4294967168 }
  0x24   :  { %218 = dma.done.wait [#allocation6], 128  }
  0x25   :  { %219 = vsyncadd [#allocation6], 4294967168  ;;  %v224_v0 = vmov 0.0   ;;  %vm225_vm0 = vmmov 0   ;;  %v36_v1 = vld [vmem:[#allocation2] sm:$0xff]  ;;  %v37_v2 = vld [vmem:[#allocation5] sm:$0xff] }
  0x26   :  { %139 = vmatprep.subr.mxu0 %v224_v0  ;;  %141 = vmatprep.mubr.msk.f32.mxu0 %vm225_vm0, %v224_v0  ;;  %v38_v3 = vsub.f32 %v36_v1, %v37_v2  ;;  %vm40_vm1 = vcmask 261120   ;;  %v226_v5 = vmov 1.0   ;;  %s227_s4 = smov [#allocation7]   ;;  %vm117_vm2 = vcmask 64512  }
  0x27   :  { %s125_s5 = sshll.u32 %s227_s4, 4  ;;  %s126_s5 = int_to_ptr.vmem [resolvable:$true] %s125_s5 }
  0x28   :  { %v39_v4 = vmul.f32 %v38_v3, %v38_v3  ;;  %s194_s1 = scalar_lea.vmem %s126_s5, 128  ;;  %p199_p3 = scmp.lt.s32.totalorder %s126_s5, %s126_s5 }
  0x29   :  { %p195_p2 = scmp.ne.s32.totalorder %s126_s5, %s194_s1  ;;  %p200_p4 = scmp.lt.s32.totalorder %s194_s1, %s194_s1 }
  0x2a   :  { %140 = vmatpush3.xpose.msk.msra.mxu0 %vm40_vm1, %v39_v4 }
  0x2b   :  { %p201_p5 = por %p200_p4, %p199_p3 }
  0x2d   :  { %142 = vmatmul.mubr.msk.f32.vlgmr.msra.gmra.mrb[0].mxu0 %vm40_vm1, %v226_v5  ;;  %p202_p6 = pnand %p201_p5, %p195_p2 }
 0x100   :  { %v113_v6 = vpop.f32.mrb[0].mxu0 }
 0x101   :  { %v143_v7 = vpop.f32.mrb[1].mxu0  ;;  %118 = vst.msk [vmem:[#allocation7] sm:$0xff] %vm117_vm2, %v113_v6 }
 0x102   :  { %205 = shalt.err (!%p202_p6)
}
 0x103   :  { %s206_s8 = scalar_lea.hbm %s281_s2, 128 }
 0x104   :  { %p207_p7 = scmp.ne.s32.totalorder %s281_s2, %s206_s8  ;;  %p210_p8 = scmp.lt.u32.totalorder %s206_s8, %s281_s2 }
 0x106   :  { %p212_p9 = pnand %p210_p8, %p207_p7 }
 0x108   :  { %215 = shalt.err (!%p212_p9)
}
 0x109   :  { %128 = dma.vmem_to_hbm [thread:$0]  %s126_s5, 128, %s281_s2, [#allocation4]  }
 0x10a   :  { %220 = dma.done.wait [#allocation4], 128  }
 0x10b   :  { %221 = vsyncadd [#allocation4], 4294967168 }
 0x10c   :  { %132 = vsyncpa [#allocation3], 1 }
 0x10d   :  { %133 = vsyncpa [#allocation6], 1 }
 0x10e   :  { %134 = vsyncpa [#allocation4], 1 }

</bundles_post_ra>
